<compile_context>
chip_gen: v7x
topology: tpu7x:2x2x1
jax: 0.10.0
libtpu: 0.0.40
codegen_flags: <defaults>
</compile_context>

<pallas_src>
import jax
import jax.numpy as jnp
from jax import lax
from jax.experimental import pallas as pl
from jax.experimental.pallas import tpu as pltpu

BN_EPS = 1e-5
LANES = 128


def _sigmoid_svm_kernel(r):
    def kernel(x_ref, wt_ref, b_ref, bnw_ref, bnb_ref, o_ref):
        x = x_ref[...]                                            # (B, D) f32

        # BatchNorm1d, training mode: biased batch statistics over axis 0.
        mean = jnp.mean(x, axis=0, keepdims=True)                 # (1, D)
        var = jnp.mean((x - mean) ** 2, axis=0, keepdims=True)    # (1, D)
        xn = (x - mean) * lax.rsqrt(var + BN_EPS)
        # BN affine with gamma pre-folded into bnw/bnb by the wrapper.
        xn = xn * bnw_ref[...] + bnb_ref[...]                     # (B, D)

        # sigmoid-kernel SVM: weights arrive pre-transposed as (D, C_pad),
        # so this is a direct MXU matmul with no in-kernel transpose.
        logits = jnp.dot(xn, wt_ref[...],
                         preferred_element_type=jnp.float32)      # (B, C_pad)
        o_ref[...] = jnp.tanh(logits + r) + b_ref[...]            # broadcast (1, C_pad)

    return kernel


def sigmoid_svm_forward(x, weights, bias, bn_weight, bn_bias, *, gamma, r):
    """x: (B, D); weights: (C, D); bias: (C,); bn_weight/bn_bias: (D,)."""
    B, D = x.shape
    C = weights.shape[0]
    C_pad = max(LANES, ((C + LANES - 1) // LANES) * LANES)        # lane-dense output

    # Pre-transpose + zero-pad the weight matrix to (D, C_pad); padded
    # classes produce tanh(r) + 0 and are sliced off below.
    wt = jnp.zeros((D, C_pad), jnp.float32)
    wt = wt.at[:, :C].set(weights.T.astype(jnp.float32))
    bias_p = jnp.zeros((1, C_pad), jnp.float32)
    bias_p = bias_p.at[:, :C].set(bias.astype(jnp.float32))

    # Fold gamma into the BN affine (tiny (D,) vectors, done once in wrapper).
    bnw2 = (bn_weight.astype(jnp.float32) * gamma).reshape(1, D)
    bnb2 = (bn_bias.astype(jnp.float32) * gamma).reshape(1, D)

    vmem = pl.BlockSpec(memory_space=pltpu.MemorySpace.VMEM)
    out_p = pl.pallas_call(
        _sigmoid_svm_kernel(float(r)),
        out_shape=jax.ShapeDtypeStruct((B, C_pad), jnp.float32),
        in_specs=[vmem, vmem, vmem, vmem, vmem],
        out_specs=vmem,
    )(x.astype(jnp.float32), wt, bias_p, bnw2, bnb2)
    return out_p[:, :C]


def reference_forward(x, weights, bias, bn_weight, bn_bias, *, gamma, r):
    mean = jnp.mean(x, axis=0, keepdims=True)
    var = jnp.mean((x - mean) ** 2, axis=0, keepdims=True)
    xn = (x - mean) / jnp.sqrt(var + BN_EPS) * bn_weight + bn_bias
    return jnp.tanh(gamma * xn @ weights.T + r) + bias


if __name__ == "__main__":
    # Module hyperparameters (small, consistent with the forward pass)
    batch = 8
    input_size = 32
    num_classes = 16
    gamma = 0.5
    r = 0.1

    key = jax.random.PRNGKey(0)
    kx, kw = jax.random.split(key)

    # Deterministic parameter init (mirrors torch.randn / zeros / BN defaults)
    x = jax.random.normal(kx, (batch, input_size), dtype=jnp.float32)
    weights = jax.random.normal(kw, (num_classes, input_size), dtype=jnp.float32)
    bias = jnp.zeros((num_classes,), dtype=jnp.float32)
    bn_weight = jnp.ones((input_size,), dtype=jnp.float32)
    bn_bias = jnp.zeros((input_size,), dtype=jnp.float32)

    out = sigmoid_svm_forward(x, weights, bias, bn_weight, bn_bias,
                              gamma=gamma, r=r)
    out = jax.block_until_ready(out)

    ref = reference_forward(x, weights, bias, bn_weight, bn_bias,
                            gamma=gamma, r=r)
    assert out.shape == (batch, num_classes)
    assert jnp.allclose(out, ref, atol=1e-5, rtol=1e-5), "mismatch vs reference"

    print("KERNEL_OK")
</pallas_src>

<mosaic_0001>
module attributes {stable_mosaic.version = 11 : i64} {
  func.func @kernel(%arg0: memref<8x32xf32, #tpu.memory_space<vmem>>, %arg1: memref<32x128xf32, #tpu.memory_space<vmem>>, %arg2: memref<1x128xf32, #tpu.memory_space<vmem>>, %arg3: memref<1x32xf32, #tpu.memory_space<vmem>>, %arg4: memref<1x32xf32, #tpu.memory_space<vmem>>, %arg5: memref<8x128xf32, #tpu.memory_space<vmem>>) attributes {dimension_semantics = [], scalar_prefetch = 0 : i64, scratch_operands = 0 : i64, tpu.core_type = #tpu.core_type<tc>} {
    %c0 = arith.constant 0 : index
    %c0_0 = arith.constant 0 : index
    %0 = vector.load %arg0[%c0, %c0_0] : memref<8x32xf32, #tpu.memory_space<vmem>>, vector<8x32xf32>
    %cst = arith.constant dense<0.000000e+00> : vector<32xf32>
    %1 = vector.multi_reduction <add>, %0, %cst [0] : vector<8x32xf32> to vector<32xf32>
    %2 = vector.shape_cast %1 : vector<32xf32> to vector<1x32xf32>
    %cst_1 = arith.constant 8.000000e+00 : f32
    %3 = vector.broadcast %cst_1 : f32 to vector<1x32xf32>
    %4 = arith.divf %2, %3 : vector<1x32xf32>
    %5 = vector.broadcast %4 : vector<1x32xf32> to vector<8x32xf32>
    %6 = arith.subf %0, %5 : vector<8x32xf32>
    %7 = arith.mulf %6, %6 : vector<8x32xf32>
    %cst_2 = arith.constant dense<0.000000e+00> : vector<32xf32>
    %8 = vector.multi_reduction <add>, %7, %cst_2 [0] : vector<8x32xf32> to vector<32xf32>
    %9 = vector.shape_cast %8 : vector<32xf32> to vector<1x32xf32>
    %cst_3 = arith.constant 8.000000e+00 : f32
    %10 = vector.broadcast %cst_3 : f32 to vector<1x32xf32>
    %11 = arith.divf %9, %10 : vector<1x32xf32>
    %12 = vector.broadcast %4 : vector<1x32xf32> to vector<8x32xf32>
    %13 = arith.subf %0, %12 : vector<8x32xf32>
    %cst_4 = arith.constant 9.99999974E-6 : f32
    %14 = vector.broadcast %cst_4 : f32 to vector<1x32xf32>
    %15 = arith.addf %11, %14 : vector<1x32xf32>
    %16 = math.rsqrt %15 : vector<1x32xf32>
    %17 = vector.broadcast %16 : vector<1x32xf32> to vector<8x32xf32>
    %18 = arith.mulf %13, %17 : vector<8x32xf32>
    %c0_5 = arith.constant 0 : index
    %c0_6 = arith.constant 0 : index
    %19 = vector.load %arg3[%c0_5, %c0_6] : memref<1x32xf32, #tpu.memory_space<vmem>>, vector<1x32xf32>
    %20 = vector.broadcast %19 : vector<1x32xf32> to vector<8x32xf32>
    %21 = arith.mulf %18, %20 : vector<8x32xf32>
    %c0_7 = arith.constant 0 : index
    %c0_8 = arith.constant 0 : index
    %22 = vector.load %arg4[%c0_7, %c0_8] : memref<1x32xf32, #tpu.memory_space<vmem>>, vector<1x32xf32>
    %23 = vector.broadcast %22 : vector<1x32xf32> to vector<8x32xf32>
    %24 = arith.addf %21, %23 : vector<8x32xf32>
    %c0_9 = arith.constant 0 : index
    %c0_10 = arith.constant 0 : index
    %25 = vector.load %arg1[%c0_9, %c0_10] : memref<32x128xf32, #tpu.memory_space<vmem>>, vector<32x128xf32>
    %cst_11 = arith.constant dense<0.000000e+00> : vector<8x128xf32>
    %26 = tpu.matmul %24, %25, %cst_11 {dimension_numbers = #tpu.dot_dimension_numbers<[1], [0], [0], [1], [0, 0, 1, 1], [], []>} : vector<8x32xf32>, vector<32x128xf32>, vector<8x128xf32> -> vector<8x128xf32>
    %cst_12 = arith.constant 1.000000e-01 : f32
    %27 = vector.broadcast %cst_12 : f32 to vector<8x128xf32>
    %28 = arith.addf %26, %27 : vector<8x128xf32>
    %29 = math.tanh %28 : vector<8x128xf32>
    %c0_13 = arith.constant 0 : index
    %c0_14 = arith.constant 0 : index
    %30 = vector.load %arg2[%c0_13, %c0_14] : memref<1x128xf32, #tpu.memory_space<vmem>>, vector<1x128xf32>
    %31 = vector.broadcast %30 : vector<1x128xf32> to vector<8x128xf32>
    %32 = arith.addf %29, %31 : vector<8x128xf32>
    %c0_15 = arith.constant 0 : index
    %c0_16 = arith.constant 0 : index
    %33 = vector.load %arg5[%c0_15, %c0_16] : memref<8x128xf32, #tpu.memory_space<vmem>>, vector<8x128xf32>
    tpu.vector_store %arg5[%c0_15, %c0_16], %32 {strides = array<i32>} : memref<8x128xf32, #tpu.memory_space<vmem>>, vector<8x128xf32>,
    return
  }
}

</mosaic_0001>

<bundles_post_ra>
// kernel: tpu_custom_call.1
= control target key start
LH: loop header
LB: loop body
LE: loop exit
PB: predicated region body
PF: predicated region fallthrough
CT: control target
= control target key end

     0   :  { %10 = vsyncpa [#allocation3], 0  ;;  %s393_s0 = inlined_call_operand.hbm [shape: f32[8,32], index: 0, kind: input, shape index: {}]   ;;  %s394_s1 = inlined_call_operand.hbm [shape: f32[32,128], index: 1, kind: input, shape index: {}]   ;;  %s395_s2 = inlined_call_operand.vmem [shape: f32[1,128], index: 2, kind: input, shape index: {}]   ;;  %s396_s3 = inlined_call_operand.vmem [shape: f32[1,32], index: 3, kind: input, shape index: {}]   ;;  %s397_s4 = inlined_call_operand.vmem [shape: f32[1,32], index: 4, kind: input, shape index: {}]   ;;  %s398_s5 = inlined_call_operand.hbm [shape: f32[8,128], index: 5, kind: output, shape index: {}]  }
   0x1   :  { %11 = vsyncpa [#allocation6], 0 }
   0x2   :  { %12 = vsyncpa [#allocation4], 0  ;;  %s300_s18 = smov [#allocation2]   ;;  %s301_s20 = smov [#allocation5]  }
   0x3   :  { %s19_s19 = sshll.u32 %s300_s18, 4  ;;  %s28_s21 = sshll.u32 %s301_s20, 4  ;;  %s20_s19 = int_to_ptr.vmem [resolvable:$true] %s19_s19  ;;  %s338_s21 = int_to_ptr.vmem [resolvable:$true] %s28_s21 }
   0x4   :  { %s228_s24 = scalar_lea.hbm %s393_s0, 128 }
   0x5   :  { %p229_p0 = scmp.ne.s32.totalorder %s393_s0, %s228_s24  ;;  %p232_p1 = scmp.lt.u32.totalorder %s228_s24, %s393_s0 }
   0x7   :  { %p234_p2 = pnand %p232_p1, %p229_p0 }
   0x9   :  { %237 = shalt.err (!%p234_p2)
}
   0xa   :  { %s238_s29 = scalar_lea.vmem %s20_s19, 128  ;;  %p243_p4 = scmp.lt.s32.totalorder %s20_s19, %s20_s19 }
   0xb   :  { %p239_p3 = scmp.ne.s32.totalorder %s20_s19, %s238_s29  ;;  %p244_p5 = scmp.lt.s32.totalorder %s238_s29, %s238_s29 }
   0xd   :  { %p245_p6 = por %p244_p5, %p243_p4 }
   0xf   :  { %p246_p7 = pnand %p245_p6, %p239_p3 }
  0x11   :  { %249 = shalt.err (!%p246_p7)
}
  0x12   :  { %22 = dma.hbm_to_vmem [thread:$0]  %s393_s0, 128, %s20_s19, [#allocation3]  }
  0x13   :  { %s250_s9 = scalar_lea.hbm %s394_s1, 512 }
  0x14   :  { %p251_p8 = scmp.ne.s32.totalorder %s394_s1, %s250_s9  ;;  %p254_p9 = scmp.lt.u32.totalorder %s250_s9, %s394_s1 }
  0x16   :  { %p256_p10 = pnand %p254_p9, %p251_p8 }
  0x18   :  { %259 = shalt.err (!%p256_p10)
}
  0x19   :  { %s260_s14 = scalar_lea.vmem %s338_s21, 512  ;;  %p265_p12 = scmp.lt.s32.totalorder %s338_s21, %s338_s21 }
  0x1a   :  { %p261_p11 = scmp.ne.s32.totalorder %s338_s21, %s260_s14  ;;  %p266_p13 = scmp.lt.s32.totalorder %s260_s14, %s260_s14 }
  0x1c   :  { %p267_p0 = por %p266_p13, %p265_p12 }
  0x1e   :  { %p268_p1 = pnand %p267_p0, %p261_p11 }
  0x20   :  { %271 = shalt.err (!%p268_p1)
}
  0x21   :  { %s302_s0 = smov 128   ;;  %s303_s15 = smov 8  }
  0x22   :  { %34 = dma.hbm_to_vmem [thread:$0]  %s394_s1, 512, %s338_s21, [#allocation6], %s302_s0, %s302_s0, %s303_s15  }
  0x23   :  { %294 = dma.done.wait [#allocation3], 128  }
  0x24   :  { %295 = vsyncadd [#allocation3], 4294967168 }
  0x25   :  { %296 = dma.done.wait [#allocation6], 512  }
  0x26   :  { %297 = vsyncadd [#allocation6], 4294966784  ;;  %v304_v0 = vmov 0.0|0.0   ;;  %vm305_vm0 = vmmov 0   ;;  %v306_v1 = vmov 0.0   ;;  %vm48_vm1 = vcmask 261120  }
  0x27   :  { %210 = vmatprep.subr.bf16.mxu0 %v304_v0  ;;  %207 = vmatprep.mubr.msk.f32.mxu0 %vm305_vm0, %v306_v1  ;;  %v87_v2 = vld [vmem:[#allocation5] sm:$0xff]  ;;  %v88_v3 = vld [vmem:[#allocation5 + $0x8] sm:$0xff]  ;;  %v89_v4 = vld [vmem:[#allocation5 + $0x10] sm:$0xff]  ;;  %s307_s23 = smov [#allocation7]  }
  0x28   :  { %v211_v5 = vpack.c.bf16 %v88_v3, %v87_v2  ;;  %v90_v6 = vld [vmem:[#allocation5 + $0x18] sm:$0xff]  ;;  %s180_s24 = sshll.u32 %s307_s23, 4  ;;  %s181_s24 = int_to_ptr.vmem [resolvable:$true] %s180_s24 }
  0x29   :  { %v47_v7 = vld [vmem:[#allocation2] sm:$0xff]  ;;  %v214_v9 = vpack.c.bf16 %v90_v6, %v89_v4  ;;  %p277_p3 = scmp.lt.s32.totalorder %s181_s24, %s181_s24 }
  0x2a   :  { %v49_v8 = vsel %vm48_vm1, %v47_v7, 0.0  ;;  %212 = vmatpush3.bf16.msra.mxu0 %v211_v5  ;;  %v190_v29 = vld [vmem:[%s396_s3] ss:$0 sm:$0xff]  ;;  %s272_s3 = scalar_lea.vmem %s181_s24, 128 }
  0x2b   :  { %v50_v10 = vrot.slane %v49_v8, 4  ;;  %213 = vmatprep.subr.bf16.mxu0 %v304_v0  ;;  %v191_v31 = vld [vmem:[%s397_s4] ss:$0 sm:$0xff]  ;;  %p273_p2 = scmp.ne.s32.totalorder %s181_s24, %s272_s3  ;;  %p278_p4 = scmp.lt.s32.totalorder %s272_s3, %s272_s3 }
  0x2c   :  { %v193_v37 = vld [vmem:[%s395_s2] ss:$0 sm:$0xff] }
  0x2d   :  { %v51_v11 = vadd.f32 %v50_v10, %v49_v8  ;;  %p279_p5 = por %p278_p4, %p277_p3 }
  0x2e   :  { %215 = vmatpush3.bf16.msra.mxu0 %v214_v9 }
  0x2f   :  { %v52_v12 = vrot.slane %v51_v11, 2  ;;  %p280_p6 = pnand %p279_p5, %p273_p2 }
  0x31   :  { %v53_v13 = vadd.f32 %v52_v12, %v51_v11 }
  0x33   :  { %v54_v14 = vrot.slane %v53_v13, 1 }
  0x35   :  { %v55_v15 = vadd.f32 %v54_v14, %v53_v13 }
  0x37   :  { %v57_v16 = vmul.f32 0.125, %v55_v15 }
  0x39   :  { %v58_v17 = vsub.f32 %v47_v7, %v57_v16 }
  0x3b   :  { %v59_v18 = vmul.f32 %v58_v17, %v58_v17 }
  0x3d   :  { %v60_v19 = vsel %vm48_vm1, %v59_v18, 0.0 }
  0x3e   :  { %v61_v20 = vrot.slane %v60_v19, 4 }
  0x40   :  { %v62_v21 = vadd.f32 %v61_v20, %v60_v19 }
  0x42   :  { %v63_v22 = vrot.slane %v62_v21, 2 }
  0x44   :  { %v64_v23 = vadd.f32 %v63_v22, %v62_v21 }
  0x46   :  { %v65_v24 = vrot.slane %v64_v23, 1 }
  0x48   :  { %v66_v25 = vadd.f32 %v65_v24, %v64_v23 }
  0x4a   :  { %v67_v26 = vmul.f32 0.125, %v66_v25 }
  0x4c   :  { %v68_v27 = vadd.f32 1e-05, %v67_v26 }
  0x4e   :  { %224 = vrsqrt.f32 %v68_v27 }
  0x58   :  { %v225_v28 = vpop.eup %224 }
  0x59   :  { %v70_v30 = vmul.f32 %v225_v28, %v58_v17 }
  0x5b   :  { %v78_v32 = vmul.f32 %v190_v29, %v70_v30 }
  0x5d   :  { %v86_v33 = vadd.f32 %v191_v31, %v78_v32 }
  0x5f   :  { %208 = vmatmul.mubr.msk.f32.vlgmr.msra.gmra.mrb[0].mxu0 %vm48_vm1, %v86_v33 }
 0x132   :  { %v160_v34 = vpop.f32.mrb[0].mxu0 }
 0x133   :  { %v161_v35 = vadd.f32 0.1, %v160_v34  ;;  %v209_v36 = vpop.f32.mrb[1].mxu0 }
 0x135   :  { %226 = vtanh.f32 %v161_v35 }
 0x13f   :  { %v227_v38 = vpop.eup %226 }
 0x140   :  { %v172_v39 = vadd.f32 %v227_v38, %v193_v37 }
 0x142   :  { %173 = vst [vmem:[#allocation7] sm:$0xff] %v172_v39 }
 0x143   :  { %283 = shalt.err (!%p280_p6)
}
 0x144   :  { %s284_s26 = scalar_lea.hbm %s398_s5, 128 }
 0x145   :  { %p285_p7 = scmp.ne.s32.totalorder %s398_s5, %s284_s26  ;;  %p288_p8 = scmp.lt.u32.totalorder %s284_s26, %s398_s5 }
 0x147   :  { %p290_p9 = pnand %p288_p8, %p285_p7 }
 0x149   :  { %293 = shalt.err (!%p290_p9)
}
 0x14a   :  { %183 = dma.vmem_to_hbm [thread:$0]  %s181_s24, 128, %s398_s5, [#allocation4]  }
 0x14b   :  { %298 = dma.done.wait [#allocation4], 128  }
 0x14c   :  { %299 = vsyncadd [#allocation4], 4294967168 }
 0x14d   :  { %187 = vsyncpa [#allocation3], 1 }
 0x14e   :  { %188 = vsyncpa [#allocation6], 1 }
 0x14f   :  { %189 = vsyncpa [#allocation4], 1 }

</bundles_post_ra>
